<compile_context>
chip_gen: v5e
topology: v5e:2x2
jax: 0.10.0
libtpu: 0.0.40
codegen_flags: <defaults>
</compile_context>

<pallas_src>
import jax
import jax.numpy as jnp
from jax import lax
from jax.experimental import pallas as pl
from jax.experimental.pallas import tpu as pltpu

_LANE = 128


def _round_up(x, m):
    return (x + m - 1) // m * m


def _visual_extractor_kernel(cols_ref, w_ref, scale_ref, shift_ref, pool_ref,
                             patch_ref, avg_ref):
    # cols_ref : (Mp, Kp)  bf16  all batches' im2col patches (rows beyond B*P are zero)
    # w_ref    : (Kp, Cp)  bf16  conv weights flattened to a matmul (zero-padded)
    # scale_ref/shift_ref : (1, Cp) f32  fused BatchNorm inference affine (zero-padded)
    # pool_ref : (B, Mp)   f32   block "averaging" matrix (AvgPool2d(7,1) on a 7x7 map)
    # patch_ref: (Mp, Cp)  f32
    # avg_ref  : (B, Cp)   f32
    y = jnp.dot(cols_ref[...], w_ref[...],
                preferred_element_type=jnp.float32)          # (Mp, Cp) bf16 MXU, f32 acc
    y = y * scale_ref[...] + shift_ref[...]                   # BatchNorm (inference affine), VPU
    y = jnp.maximum(y, 0.0)                                   # ReLU
    patch_ref[...] = y.astype(patch_ref.dtype)
    # AvgPool2d(kernel_size=7, stride=1, padding=0) over a 7x7 map == per-batch mean over the
    # 49 positions, expressed as a tiny pooling matmul (padded rows hit zero pool columns).
    avg_ref[...] = jnp.dot(pool_ref[...], y,
                           preferred_element_type=jnp.float32).astype(avg_ref.dtype)


def visual_extractor_forward(cols, w2d, scale, shift):
    """cols: (B, P, K) im2col patches. Returns (patch_feats (B,P,Cout), avg_feats (B,Cout))."""
    B, P, K = cols.shape
    Cout = w2d.shape[1]
    if P != 7 * 7:
        # AvgPool2d(7,1,0) + squeeze in the reference module is a global mean only for a
        # 7x7 feature map (densenet121 @ 224x224); enforce rather than silently mis-pool.
        raise ValueError(f"expected a 7x7 feature map (P=49), got P={P}")

    Kp = _round_up(K, _LANE)      # lane-dense K    (27 -> 128); zero-padded -> no numeric change
    Cp = _round_up(Cout, _LANE)   # lane-dense Cout (32 -> 128); real DenseNet Cout=1024 needs no pad
    M = B * P
    Mp = _round_up(M, _LANE)      # sublane-dense matmul rows AND lane-dense pool contraction dim

    cols_p = jnp.pad(cols.reshape(M, K),
                     ((0, Mp - M), (0, Kp - K))).astype(jnp.bfloat16)
    w_p = jnp.pad(w2d, ((0, Kp - K), (0, Cp - Cout))).astype(jnp.bfloat16)
    scale_p = jnp.pad(scale.reshape(1, Cout), ((0, 0), (0, Cp - Cout))).astype(jnp.float32)
    shift_p = jnp.pad(shift.reshape(1, Cout), ((0, 0), (0, Cp - Cout))).astype(jnp.float32)
    # (B, Mp) averaging matrix: row b averages rows [b*P, (b+1)*P); padded columns are zero,
    # so the zero-padded (and ReLU(shift)-contaminated) extra rows never reach avg_feats.
    pool = jnp.pad(jnp.repeat(jnp.eye(B, dtype=jnp.float32), P, axis=1) * (1.0 / P),
                   ((0, 0), (0, Mp - M)))

    patch_p, avg_p = pl.pallas_call(
        _visual_extractor_kernel,
        out_shape=(jax.ShapeDtypeStruct((Mp, Cp), jnp.float32),
                   jax.ShapeDtypeStruct((B, Cp), jnp.float32)),
        grid=(1,),                                    # whole problem in a single pipeline step
        in_specs=[
            pl.BlockSpec((Mp, Kp), lambda i: (0, 0)),
            pl.BlockSpec((Kp, Cp), lambda i: (0, 0)),
            pl.BlockSpec((1, Cp), lambda i: (0, 0)),
            pl.BlockSpec((1, Cp), lambda i: (0, 0)),
            pl.BlockSpec((B, Mp), lambda i: (0, 0)),
        ],
        out_specs=(
            pl.BlockSpec((Mp, Cp), lambda i: (0, 0)),
            pl.BlockSpec((B, Cp), lambda i: (0, 0)),
        ),
        compiler_params=pltpu.CompilerParams(dimension_semantics=("arbitrary",)),
    )(cols_p, w_p, scale_p, shift_p, pool)

    patch_feats = patch_p[:M, :Cout].reshape(B, P, Cout)  # == feats.reshape(B,C,-1).permute(0,2,1)
    avg_feats = avg_p[:, :Cout]                           # == AvgPool2d(7,1)(feats).squeeze().reshape(-1,C)
    return patch_feats, avg_feats


def im2col_bpk(images_nchw, kh=3, kw=3, stride=2, pad=1):
    """Extract conv patches directly in (B, P, K) layout (K last -> lane dim); no K/P transpose."""
    x = jnp.transpose(images_nchw, (0, 2, 3, 1))          # NCHW -> NHWC (cheap: only Cin channels)
    patches = lax.conv_general_dilated_patches(
        x, filter_shape=(kh, kw), window_strides=(stride, stride),
        padding=((pad, pad), (pad, pad)),
        dimension_numbers=("NHWC", "HWIO", "NHWC"))        # (B, Ho, Wo, Cin*kh*kw)
    B, Ho, Wo, K = patches.shape
    return patches.reshape(B, Ho * Wo, K), Ho, Wo          # reshape is free (contiguous)


if __name__ == "__main__":
    key = jax.random.PRNGKey(0)
    k_img, k_w, k_g, k_b, k_m, k_v = jax.random.split(key, 6)

    # Small, densenet-consistent shapes: stride-2 conv on 14x14 -> 7x7 feature map
    B, Cin, H, W = 2, 3, 14, 14
    Cout = 32
    images = jax.random.normal(k_img, (B, Cin, H, W), dtype=jnp.float32)  # NCHW, as in PyTorch

    # Deterministic synthetic parameters (shapes dictated by the conv+BN stage)
    K = Cin * 3 * 3
    w2d = 0.1 * jax.random.normal(k_w, (K, Cout), dtype=jnp.float32)
    gamma = 1.0 + 0.05 * jax.random.normal(k_g, (Cout,), dtype=jnp.float32)
    beta = 0.05 * jax.random.normal(k_b, (Cout,), dtype=jnp.float32)
    run_mean = 0.01 * jax.random.normal(k_m, (Cout,), dtype=jnp.float32)
    run_var = 1.0 + 0.1 * jax.random.uniform(k_v, (Cout,), dtype=jnp.float32)
    inv_std = 1.0 / jnp.sqrt(run_var + 1e-5)
    scale = gamma * inv_std
    shift = beta - run_mean * gamma * inv_std

    cols, Ho, Wo = im2col_bpk(images)                 # (B, 49, 27), Ho = Wo = 7
    assert Ho == 7 and Wo == 7                        # AvgPool2d(7,1) -> 1x1, as in densenet121

    patch_feats, avg_feats = visual_extractor_forward(cols, w2d, scale, shift)
    jax.block_until_ready((patch_feats, avg_feats))

    # Pure-JAX reference for the same fused stage (same bf16-rounded matmul operands).
    cols_r = cols.astype(jnp.bfloat16).astype(jnp.float32)
    w_r = w2d.astype(jnp.bfloat16).astype(jnp.float32)
    pre = jnp.einsum("bpk,kc->bpc", cols_r, w_r, precision=lax.Precision.HIGHEST)
    ref = jnp.maximum(pre * scale.reshape(1, 1, Cout) + shift.reshape(1, 1, Cout), 0.0)
    ref_patch = ref                     # (B, P, Cout) == permuted patch feats
    ref_avg = ref.mean(axis=1)          # (B, Cout)    == 7x7 avg-pool + squeeze

    assert patch_feats.shape == (B, Ho * Wo, Cout)
    assert avg_feats.shape == (B, Cout)
    assert jnp.allclose(patch_feats, ref_patch, atol=1e-3, rtol=1e-2)
    assert jnp.allclose(avg_feats, ref_avg, atol=2e-2, rtol=2e-2)

    print("KERNEL_OK")
</pallas_src>

<mosaic_0001>
module attributes {stable_mosaic.version = 11 : i64} {
  func.func @_visual_extractor_kernel(%arg0: i32, %arg1: memref<128x128xbf16, #tpu.memory_space<vmem>>, %arg2: memref<128x128xbf16, #tpu.memory_space<vmem>>, %arg3: memref<1x128xf32, #tpu.memory_space<vmem>>, %arg4: memref<1x128xf32, #tpu.memory_space<vmem>>, %arg5: memref<2x128xf32, #tpu.memory_space<vmem>>, %arg6: memref<128x128xf32, #tpu.memory_space<vmem>>, %arg7: memref<2x128xf32, #tpu.memory_space<vmem>>) attributes {dimension_semantics = [#tpu.dimension_semantics<arbitrary>], iteration_bounds = array<i64: 1>, scalar_prefetch = 0 : i64, scratch_operands = 0 : i64, tpu.core_type = #tpu.core_type<tc>, window_params = [{pipeline_mode = #tpu.pipeline_mode<synchronous>, transform_indices = @transform_0, window_bounds = array<i64: 128, 128>}, {pipeline_mode = #tpu.pipeline_mode<synchronous>, transform_indices = @transform_1, window_bounds = array<i64: 128, 128>}, {pipeline_mode = #tpu.pipeline_mode<synchronous>, transform_indices = @transform_2, window_bounds = array<i64: 1, 128>}, {pipeline_mode = #tpu.pipeline_mode<synchronous>, transform_indices = @transform_3, window_bounds = array<i64: 1, 128>}, {pipeline_mode = #tpu.pipeline_mode<synchronous>, transform_indices = @transform_4, window_bounds = array<i64: 2, 128>}, {pipeline_mode = #tpu.pipeline_mode<synchronous>, transform_indices = @transform_5, window_bounds = array<i64: 128, 128>}, {pipeline_mode = #tpu.pipeline_mode<synchronous>, transform_indices = @transform_6, window_bounds = array<i64: 2, 128>}]} {
    %c0 = arith.constant 0 : index
    %c0_0 = arith.constant 0 : index
    %0 = vector.load %arg1[%c0, %c0_0] : memref<128x128xbf16, #tpu.memory_space<vmem>>, vector<128x128xbf16>
    %c0_1 = arith.constant 0 : index
    %c0_2 = arith.constant 0 : index
    %1 = vector.load %arg2[%c0_1, %c0_2] : memref<128x128xbf16, #tpu.memory_space<vmem>>, vector<128x128xbf16>
    %cst = arith.constant dense<0.000000e+00> : vector<128x128xf32>
    %2 = tpu.matmul %0, %1, %cst {dimension_numbers = #tpu.dot_dimension_numbers<[1], [0], [0], [1], [0, 0, 1, 1], [], []>} : vector<128x128xbf16>, vector<128x128xbf16>, vector<128x128xf32> -> vector<128x128xf32>
    %c0_3 = arith.constant 0 : index
    %c0_4 = arith.constant 0 : index
    %3 = vector.load %arg3[%c0_3, %c0_4] : memref<1x128xf32, #tpu.memory_space<vmem>>, vector<1x128xf32>
    %4 = vector.broadcast %3 : vector<1x128xf32> to vector<128x128xf32>
    %5 = arith.mulf %2, %4 : vector<128x128xf32>
    %c0_5 = arith.constant 0 : index
    %c0_6 = arith.constant 0 : index
    %6 = vector.load %arg4[%c0_5, %c0_6] : memref<1x128xf32, #tpu.memory_space<vmem>>, vector<1x128xf32>
    %7 = vector.broadcast %6 : vector<1x128xf32> to vector<128x128xf32>
    %8 = arith.addf %5, %7 : vector<128x128xf32>
    %cst_7 = arith.constant 0.000000e+00 : f32
    %9 = vector.broadcast %cst_7 : f32 to vector<128x128xf32>
    %10 = arith.maximumf %8, %9 : vector<128x128xf32>
    %c0_8 = arith.constant 0 : index
    %c0_9 = arith.constant 0 : index
    %11 = vector.load %arg6[%c0_8, %c0_9] : memref<128x128xf32, #tpu.memory_space<vmem>>, vector<128x128xf32>
    tpu.vector_store %arg6[%c0_8, %c0_9], %10 {strides = array<i32>} : memref<128x128xf32, #tpu.memory_space<vmem>>, vector<128x128xf32>,
    %c0_10 = arith.constant 0 : index
    %c0_11 = arith.constant 0 : index
    %12 = vector.load %arg5[%c0_10, %c0_11] : memref<2x128xf32, #tpu.memory_space<vmem>>, vector<2x128xf32>
    %cst_12 = arith.constant dense<0.000000e+00> : vector<2x128xf32>
    %13 = tpu.matmul %12, %10, %cst_12 {dimension_numbers = #tpu.dot_dimension_numbers<[1], [0], [0], [1], [0, 0, 1, 1], [], []>} : vector<2x128xf32>, vector<128x128xf32>, vector<2x128xf32> -> vector<2x128xf32>
    %c0_13 = arith.constant 0 : index
    %c0_14 = arith.constant 0 : index
    %14 = vector.load %arg7[%c0_13, %c0_14] : memref<2x128xf32, #tpu.memory_space<vmem>>, vector<2x128xf32>
    tpu.vector_store %arg7[%c0_13, %c0_14], %13 {strides = array<i32>} : memref<2x128xf32, #tpu.memory_space<vmem>>, vector<2x128xf32>,
    return
  }
  func.func @transform_0(%arg0: i32) -> (i32, i32) {
    %c0_i32 = arith.constant 0 : i32
    %c0_i32_0 = arith.constant 0 : i32
    %c0_i32_1 = arith.constant 0 : i32
    return %c0_i32, %c0_i32_0 : i32, i32
  }
  func.func @transform_1(%arg0: i32) -> (i32, i32) {
    %c0_i32 = arith.constant 0 : i32
    %c0_i32_0 = arith.constant 0 : i32
    %c0_i32_1 = arith.constant 0 : i32
    return %c0_i32, %c0_i32_0 : i32, i32
  }
  func.func @transform_2(%arg0: i32) -> (i32, i32) {
    %c0_i32 = arith.constant 0 : i32
    %c0_i32_0 = arith.constant 0 : i32
    %c0_i32_1 = arith.constant 0 : i32
    return %c0_i32, %c0_i32_0 : i32, i32
  }
  func.func @transform_3(%arg0: i32) -> (i32, i32) {
    %c0_i32 = arith.constant 0 : i32
    %c0_i32_0 = arith.constant 0 : i32
    %c0_i32_1 = arith.constant 0 : i32
    return %c0_i32, %c0_i32_0 : i32, i32
  }
  func.func @transform_4(%arg0: i32) -> (i32, i32) {
    %c0_i32 = arith.constant 0 : i32
    %c0_i32_0 = arith.constant 0 : i32
    %c0_i32_1 = arith.constant 0 : i32
    return %c0_i32, %c0_i32_0 : i32, i32
  }
  func.func @transform_5(%arg0: i32) -> (i32, i32) {
    %c0_i32 = arith.constant 0 : i32
    %c0_i32_0 = arith.constant 0 : i32
    %c0_i32_1 = arith.constant 0 : i32
    return %c0_i32, %c0_i32_0 : i32, i32
  }
  func.func @transform_6(%arg0: i32) -> (i32, i32) {
    %c0_i32 = arith.constant 0 : i32
    %c0_i32_0 = arith.constant 0 : i32
    %c0_i32_1 = arith.constant 0 : i32
    return %c0_i32, %c0_i32_0 : i32, i32
  }
}

</mosaic_0001>

<bundles_post_ra>
// kernel: tpu_custom_call.1
= control target key start
LH: loop header
LB: loop body
LE: loop exit
PB: predicated region body
PF: predicated region fallthrough
CT: control target
= control target key end

     0   :  { %12 = vsyncpa [#allocation3], 0  ;;  %s755_s0 = inlined_call_operand.hbm [shape: bf16[128,128], index: 0, kind: input, shape index: {}]   ;;  %s756_s1 = inlined_call_operand.hbm [shape: bf16[128,128], index: 1, kind: input, shape index: {}]   ;;  %s757_s2 = inlined_call_operand.vmem [shape: f32[1,128], index: 2, kind: input, shape index: {}]   ;;  %s758_s3 = inlined_call_operand.hbm [shape: f32[1,128], index: 3, kind: input, shape index: {}]   ;;  %s759_s4 = inlined_call_operand.vmem [shape: f32[2,128], index: 4, kind: input, shape index: {}]   ;;  %s760_s5 = inlined_call_operand.hbm [shape: f32[128,128], index: 5, kind: output, shape index: {0}]   ;;  %s761_s6 = inlined_call_operand.hbm [shape: f32[2,128], index: 6, kind: output, shape index: {1}]  }
   0x1   :  { %13 = vsyncpa [#allocation6], 0 }
   0x2   :  { %14 = vsyncpa [#allocation4], 0 }
   0x3   :  { %15 = vsyncpa [#allocation10], 0  ;;  %s33_s23 = sshll.u32 %s756_s1, 4  ;;  %s619_s24 = smov [#allocation5]   ;;  %s34_s23 = int_to_ptr.hbm [resolvable:$true] %s33_s23 }
   0x4   :  { %s35_s25 = sshll.u32 %s619_s24, 4  ;;  %s20_s28 = sshll.u32 %s755_s0, 4  ;;  %s36_s25 = int_to_ptr.vmem [resolvable:$true] %s35_s25  ;;  %s21_s28 = int_to_ptr.hbm [resolvable:$true] %s20_s28 }
   0x5   :  { %s620_s29 = smov 64   ;;  %s621_s30 = smov 4  }
   0x6   :  { %41 = dma.hbm_to_vmem [thread:$0]  %s34_s23, 1024, %s36_s25, [#allocation6], %s620_s29, %s620_s29, %s621_s30  }
   0x7   :  { %s622_s7 = smov [#allocation2]   ;;  %s49_s11 = sshll.u32 %s758_s3, 4  ;;  %s50_s11 = int_to_ptr.hbm [resolvable:$true] %s49_s11 }
   0x8   :  { %s22_s8 = sshll.u32 %s622_s7, 4  ;;  %s623_s1 = smov [#allocation7]   ;;  %s23_s8 = int_to_ptr.vmem [resolvable:$true] %s22_s8 }
   0x9   :  { %28 = dma.hbm_to_vmem [thread:$0]  %s21_s28, 1024, %s23_s8, [#allocation3], %s620_s29, %s620_s29, %s621_s30  }
   0xa   :  { %s51_s12 = sshll.u32 %s623_s1, 4  ;;  %s52_s12 = int_to_ptr.vmem [resolvable:$true] %s51_s12 }
   0xb   :  { %54 = dma.hbm_to_vmem [thread:$0]  %s50_s11, 16, %s52_s12, [#allocation6]  }
   0xc   :  { %611 = dma.done.wait [#allocation3], 1024  }
   0xd   :  { %612 = vsyncadd [#allocation3], 4294966272 }
   0xe   :  { %613 = dma.done.wait [#allocation6], 1040  }
   0xf   :  { %614 = vsyncadd [#allocation6], 4294966256  ;;  %v455_v0 = vld [vmem:[#allocation5 + $0x38] sm:$0xff]  ;;  %v454_v1 = vld [vmem:[#allocation5 + $0x30] sm:$0xff]  ;;  %s624_s14 = smov [#allocation8]   ;;  %s346_s18 = sshll.u32 %s760_s5, 4  ;;  %s347_s18 = int_to_ptr.hbm [resolvable:$true] %s346_s18 }
  0x10   :  { %458 = vmatpush.bf16.msra.mxu3 %v455_v0  ;;  %456 = vmatpush.bf16.msra.mxu1 %v455_v0  ;;  %v453_v2 = vld [vmem:[#allocation5 + $0x28] sm:$0xff]  ;;  %v452_v3 = vld [vmem:[#allocation5 + $0x20] sm:$0xff]  ;;  %v451_v4 = vld [vmem:[#allocation5 + $0x18] sm:$0xff]  ;;  %s344_s15 = sshll.u32 %s624_s14, 4  ;;  %s625_s19 = smov 128   ;;  %s345_s15 = int_to_ptr.vmem [resolvable:$true] %s344_s15 }
  0x11   :  { %457 = vmatpush.bf16.msra.mxu2 %v455_v0  ;;  %197 = vmatpush.bf16.msra.mxu0 %v455_v0  ;;  %v450_v5 = vld [vmem:[#allocation5 + $0x10] sm:$0xff]  ;;  %v449_v6 = vld [vmem:[#allocation5 + $0x8] sm:$0xff]  ;;  %v448_v7 = vld [vmem:[#allocation5] sm:$0xff]  ;;  %s626_s20 = smov 8   ;;  %s627_s21 = smov [#allocation9]  }
  0x12   :  { %v445_v8 = vld [vmem:[#allocation2 + $0x28] sm:$0xff]  ;;  %v442_v9 = vld [vmem:[#allocation2 + $0x10] sm:$0xff]  ;;  %v444_v10 = vld [vmem:[#allocation2 + $0x20] sm:$0xff]  ;;  %s358_s22 = sshll.u32 %s627_s21, 4  ;;  %s359_s22 = int_to_ptr.vmem [resolvable:$true] %s358_s22 }
  0x13   :  { %v440_v11 = vld [vmem:[#allocation2] sm:$0xff]  ;;  %v446_v12 = vld [vmem:[#allocation2 + $0x30] sm:$0xff]  ;;  %v443_v13 = vld [vmem:[#allocation2 + $0x18] sm:$0xff] }
  0x14   :  { %461 = vmatpush.bf16.msra.mxu3 %v454_v1  ;;  %459 = vmatpush.bf16.msra.mxu1 %v454_v1  ;;  %v441_v14 = vld [vmem:[#allocation2 + $0x8] sm:$0xff]  ;;  %v447_v15 = vld [vmem:[#allocation2 + $0x38] sm:$0xff]  ;;  %v675_v18 = vld [vmem:[%s757_s2] ss:$0 sm:$0xff] }
  0x15   :  { %460 = vmatpush.bf16.msra.mxu2 %v454_v1  ;;  %198 = vmatpush.bf16.msra.mxu0 %v454_v1  ;;  %v678_v20 = vld [vmem:[#allocation7] ss:$0 sm:$0xff] }
  0x18   :  { %464 = vmatpush.bf16.msra.mxu3 %v453_v2  ;;  %462 = vmatpush.bf16.msra.mxu1 %v453_v2 }
  0x19   :  { %463 = vmatpush.bf16.msra.mxu2 %v453_v2  ;;  %199 = vmatpush.bf16.msra.mxu0 %v453_v2 }
  0x1c   :  { %467 = vmatpush.bf16.msra.mxu3 %v452_v3  ;;  %465 = vmatpush.bf16.msra.mxu1 %v452_v3 }
  0x1d   :  { %466 = vmatpush.bf16.msra.mxu2 %v452_v3  ;;  %200 = vmatpush.bf16.msra.mxu0 %v452_v3 }
  0x20   :  { %470 = vmatpush.bf16.msra.mxu3 %v451_v4  ;;  %468 = vmatpush.bf16.msra.mxu1 %v451_v4 }
  0x21   :  { %469 = vmatpush.bf16.msra.mxu2 %v451_v4  ;;  %201 = vmatpush.bf16.msra.mxu0 %v451_v4 }
  0x24   :  { %473 = vmatpush.bf16.msra.mxu3 %v450_v5  ;;  %471 = vmatpush.bf16.msra.mxu1 %v450_v5 }
  0x25   :  { %472 = vmatpush.bf16.msra.mxu2 %v450_v5  ;;  %202 = vmatpush.bf16.msra.mxu0 %v450_v5 }
  0x28   :  { %476 = vmatpush.bf16.msra.mxu3 %v449_v6  ;;  %474 = vmatpush.bf16.msra.mxu1 %v449_v6 }
  0x29   :  { %475 = vmatpush.bf16.msra.mxu2 %v449_v6  ;;  %203 = vmatpush.bf16.msra.mxu0 %v449_v6 }
  0x2c   :  { %479 = vmatpush.bf16.msra.mxu3 %v448_v7  ;;  %477 = vmatpush.bf16.msra.mxu1 %v448_v7 }
  0x2d   :  { %478 = vmatpush.bf16.msra.mxu2 %v448_v7  ;;  %204 = vmatpush.bf16.msra.mxu0 %v448_v7 }
  0x2f   :  { %230 = vmatmul.bf16.vlgmr.msra.gmra.mxu3 %v445_v8  ;;  %215 = vmatmul.bf16.vlgmr.msra.gmra.mxu1 %v442_v9 }
  0x30   :  { %225 = vmatmul.bf16.vlgmr.msra.gmra.mxu2 %v444_v10  ;;  %205 = vmatmul.bf16.vlgmr.msra.gmra.mxu0 %v440_v11 }
  0x3f   :  { %235 = vmatmul.bf16.gmra.mxu3 %v446_v12  ;;  %220 = vmatmul.bf16.gmra.mxu1 %v443_v13 }
  0x40   :  { %210 = vmatmul.bf16.gmra.mxu0 %v441_v14 }
  0x4f   :  { %240 = vmatmul.bf16.gmra.mxu3 %v447_v15 }
  0xac   :  { %v216_v16 = vpop.f32.mrf.mxu1 }
  0xad   :  { %v206_v17 = vpop.f32.mrf.mxu0  ;;  %v254_v19 = vmul.f32 %v675_v18, %v216_v16 }
  0xae   :  { %v250_v35 = vmul.f32 %v675_v18, %v206_v17 }
  0xaf   :  { %v686_v27 = vadd.f32 %v678_v20, %v254_v19 }
  0xb0   :  { %v710_v43 = vadd.f32 %v678_v20, %v250_v35 }
  0xb1   :  { %v290_v31 = vmax.f32 %v686_v27, 0.0 }
  0xb2   :  { %v231_v21 = vpop.f32.mrf.mxu3  ;;  %v286_v46 = vmax.f32 %v710_v43, 0.0 }
  0xb3   :  { %v260_v22 = vmul.f32 %v675_v18, %v231_v21  ;;  %v226_v24 = vpop.f32.mrf.mxu2  ;;  %306 = vst [vmem:[#allocation8 + $0x20] sm:$0xff] %v290_v31 }
  0xb4   :  { %v218_v23 = vpop.f32.mrf.mxu1  ;;  %v258_v39 = vmul.f32 %v675_v18, %v226_v24  ;;  %302 = vst [vmem:[#allocation8] sm:$0xff] %v286_v46 }
  0xb5   :  { %v255_v25 = vmul.f32 %v675_v18, %v218_v23  ;;  %v683_v26 = vadd.f32 %v678_v20, %v260_v22  ;;  %v208_v28 = vpop.f32.mrf.mxu0 }
  0xb6   :  { %v251_v32 = vmul.f32 %v675_v18, %v208_v28  ;;  %v278_v50 = vadd.f32 %v678_v20, %v258_v39 }
  0xb7   :  { %v296_v29 = vmax.f32 %v683_v26, 0.0  ;;  %v690_v30 = vadd.f32 %v678_v20, %v255_v25 }
  0xb8   :  { %v707_v42 = vadd.f32 %v678_v20, %v251_v32  ;;  %v294_v54 = vmax.f32 %v278_v50, 0.0 }
  0xb9   :  { %312 = vst [vmem:[#allocation8 + $0x50] sm:$0xff] %v296_v29  ;;  %v291_v33 = vmax.f32 %v690_v30, 0.0 }
  0xba   :  { %v233_v34 = vpop.f32.mrf.mxu3  ;;  %v287_v45 = vmax.f32 %v707_v42, 0.0  ;;  %310 = vst [vmem:[#allocation8 + $0x40] sm:$0xff] %v294_v54 }
  0xbb   :  { %v261_v36 = vmul.f32 %v675_v18, %v233_v34  ;;  %307 = vst [vmem:[#allocation8 + $0x28] sm:$0xff] %v291_v33  ;;  %v228_v38 = vpop.f32.mrf.mxu2 }
  0xbc   :  { %v221_v37 = vpop.f32.mrf.mxu1  ;;  %v259_v40 = vmul.f32 %v675_v18, %v228_v38  ;;  %303 = vst [vmem:[#allocation8 + $0x8] sm:$0xff] %v287_v45 }
  0xbd   :  { %v281_v41 = vadd.f32 %v678_v20, %v261_v36  ;;  %v256_v47 = vmul.f32 %v675_v18, %v221_v37  ;;  %v211_v48 = vpop.f32.mrf.mxu0 }
  0xbe   :  { %v279_v49 = vadd.f32 %v678_v20, %v259_v40  ;;  %v252_v62 = vmul.f32 %v675_v18, %v211_v48 }
  0xbf   :  { %v297_v44 = vmax.f32 %v281_v41, 0.0  ;;  %v276_v58 = vadd.f32 %v678_v20, %v256_v47 }
  0xc0   :  { %v295_v53 = vmax.f32 %v279_v49, 0.0  ;;  %v272_v6 = vadd.f32 %v678_v20, %v252_v62 }
  0xc1   :  { %313 = vst [vmem:[#allocation8 + $0x58] sm:$0xff] %v297_v44  ;;  %v292_v61 = vmax.f32 %v276_v58, 0.0 }
  0xc2   :  { %v236_v51 = vpop.f32.mrf.mxu3  ;;  %311 = vst [vmem:[#allocation8 + $0x48] sm:$0xff] %v295_v53  ;;  %v288_v9 = vmax.f32 %v272_v6, 0.0 }
  0xc3   :  { %v262_v52 = vmul.f32 %v675_v18, %v236_v51  ;;  %308 = vst [vmem:[#allocation8 + $0x30] sm:$0xff] %v292_v61 }
  0xc4   :  { %v223_v55 = vpop.f32.mrf.mxu1  ;;  %304 = vst [vmem:[#allocation8 + $0x10] sm:$0xff] %v288_v9 }
  0xc5   :  { %v257_v56 = vmul.f32 %v675_v18, %v223_v55  ;;  %v282_v57 = vadd.f32 %v678_v20, %v262_v52  ;;  %v213_v63 = vpop.f32.mrf.mxu0 }
  0xc6   :  { %v253_v2 = vmul.f32 %v675_v18, %v213_v63 }
  0xc7   :  { %v298_v59 = vmax.f32 %v282_v57, 0.0  ;;  %v277_v60 = vadd.f32 %v678_v20, %v257_v56 }
  0xc8   :  { %v273_v5 = vadd.f32 %v678_v20, %v253_v2 }
  0xc9   :  { %314 = vst [vmem:[#allocation8 + $0x60] sm:$0xff] %v298_v59  ;;  %v293_v0 = vmax.f32 %v277_v60, 0.0 }
  0xca   :  { %v238_v1 = vpop.f32.mrf.mxu3  ;;  %v289_v8 = vmax.f32 %v273_v5, 0.0 }
  0xcb   :  { %v263_v3 = vmul.f32 %v675_v18, %v238_v1  ;;  %309 = vst [vmem:[#allocation8 + $0x38] sm:$0xff] %v293_v0 }
  0xcc   :  { %305 = vst [vmem:[#allocation8 + $0x18] sm:$0xff] %v289_v8 }
  0xcd   :  { %v283_v4 = vadd.f32 %v678_v20, %v263_v3 }
  0xcf   :  { %v299_v7 = vmax.f32 %v283_v4, 0.0 }
  0xd1   :  { %315 = vst [vmem:[#allocation8 + $0x68] sm:$0xff] %v299_v7 }
  0xd2   :  { %v241_v10 = vpop.f32.mrf.mxu3 }
  0xd3   :  { %v264_v11 = vmul.f32 %v675_v18, %v241_v10 }
  0xd5   :  { %v284_v12 = vadd.f32 %v678_v20, %v264_v11 }
  0xd7   :  { %v300_v13 = vmax.f32 %v284_v12, 0.0 }
  0xd9   :  { %316 = vst [vmem:[#allocation8 + $0x70] sm:$0xff] %v300_v13 }
  0xda   :  { %v243_v14 = vpop.f32.mrf.mxu3 }
  0xdb   :  { %v265_v15 = vmul.f32 %v675_v18, %v243_v14  ;;  %v318_v18 = vld [vmem:[%s759_s4] sm:$0x3]  ;;  %s360_s4 = sshll.u32 %s761_s6, 4  ;;  %s361_s4 = int_to_ptr.hbm [resolvable:$true] %s360_s4 }
  0xdd   :  { %v285_v16 = vadd.f32 %v678_v20, %v265_v15 }
  0xdf   :  { %v301_v17 = vmax.f32 %v285_v16, 0.0 }
  0xe1   :  { %317 = vst [vmem:[#allocation8 + $0x78] sm:$0xff] %v301_v17  ;;  %319 = vmatpush.msrb.mxu1 %v301_v17 }
  0xe2   :  { %352 = dma.vmem_to_hbm [thread:$0]  %s345_s15, 2048, %s347_s18, [#allocation4], %s625_s19, %s625_s19, %s626_s20  }
  0xe3   :  { %320 = vmatpush.msrb.mxu1 %v300_v13 }
  0xe5   :  { %321 = vmatpush.msrb.mxu1 %v299_v7 }
  0xe7   :  { %322 = vmatpush.msrb.mxu1 %v298_v59 }
  0xe9   :  { %323 = vmatpush.msrb.mxu1 %v297_v44 }
  0xeb   :  { %324 = vmatpush.msrb.mxu1 %v296_v29 }
  0xed   :  { %325 = vmatpush.msrb.mxu1 %v295_v53 }
  0xef   :  { %326 = vmatpush.msrb.mxu1 %v294_v54 }
  0xf1   :  { %327 = vmatpush.msrb.mxu1 %v293_v0 }
  0xf3   :  { %328 = vmatpush.msrb.mxu1 %v292_v61 }
  0xf5   :  { %329 = vmatpush.msrb.mxu1 %v291_v33 }
  0xf7   :  { %330 = vmatpush.msrb.mxu1 %v290_v31 }
  0xf9   :  { %331 = vmatpush.msrb.mxu1 %v289_v8 }
  0xfb   :  { %332 = vmatpush.msrb.mxu1 %v288_v9 }
  0xfd   :  { %333 = vmatpush.msrb.mxu1 %v287_v45 }
  0xff   :  { %334 = vmatpush.msrb.mxu1 %v286_v46 }
 0x100   :  { %335 = vmatmul.f32.vlgmr.msrb.gmra.mxu1 %v318_v18 }
 0x17d   :  { %v336_v19 = vpop.f32.mrf.mxu1 }
 0x17e   :  { %339 = vst [vmem:[#allocation9] sm:$0x3] %v336_v19 }
 0x17f   :  { %363 = dma.vmem_to_hbm [thread:$0]  %s359_s22, 32, %s361_s4, [#allocation10]  }
 0x180   :  { %615 = dma.done.wait [#allocation4], 2048  }
 0x181   :  { %616 = vsyncadd [#allocation4], 4294965248 }
 0x182   :  { %617 = dma.done.wait [#allocation10], 32  }
 0x183   :  { %618 = vsyncadd [#allocation10], 4294967264 }
 0x184   :  { %372 = vsyncpa [#allocation3], 1 }
 0x185   :  { %373 = vsyncpa [#allocation6], 1 }
 0x186   :  { %374 = vsyncpa [#allocation4], 1 }
 0x187   :  { %375 = vsyncpa [#allocation10], 1 }

</bundles_post_ra>
